<compile_context>
chip_gen: v7x
topology: tpu7x:2x2x1
jax: 0.10.0
libtpu: 0.0.40
codegen_flags: <defaults>
</compile_context>

<pallas_src>
import jax
import jax.numpy as jnp
from jax.experimental import pallas as pl
from jax.experimental.pallas import tpu as pltpu


def _round_up(x, m):
    return (x + m - 1) // m * m


def _critic_kernel_obs_act(obs_ref, act_ref, w1o_ref, w1a_ref, b1_ref,
                           w2_ref, b2_ref, w3_ref, b3_ref, o_ref):
    mm_dtype = w1o_ref.dtype  # bf16 by default; f32 if init used matmul_dtype=float32
    # fc1 split over obs / action (fuses the torch.cat into the matmul), f32 accumulation.
    h1 = jnp.dot(obs_ref[...].astype(mm_dtype), w1o_ref[...],
                 preferred_element_type=jnp.float32)
    h1 = h1 + jnp.dot(act_ref[...].astype(mm_dtype), w1a_ref[...],
                      preferred_element_type=jnp.float32)
    h1 = jnp.maximum(h1 + b1_ref[...], 0.0)                       # f32
    # fc2 + ReLU, f32 accumulation.
    h2 = jnp.dot(h1.astype(w2_ref.dtype), w2_ref[...],
                 preferred_element_type=jnp.float32) + b2_ref[...]
    h2 = jnp.maximum(h2, 0.0)                                     # f32
    # q head: exact-f32 VPU multiply + lane reduction (no wasted N=1 MXU push/pop).
    o_ref[...] = jnp.sum(h2 * w3_ref[...], axis=-1, keepdims=True) + b3_ref[0, 0]


def _critic_kernel_obs(obs_ref, w1o_ref, b1_ref, w2_ref, b2_ref, w3_ref, b3_ref, o_ref):
    mm_dtype = w1o_ref.dtype
    h1 = jnp.dot(obs_ref[...].astype(mm_dtype), w1o_ref[...],
                 preferred_element_type=jnp.float32)
    h1 = jnp.maximum(h1 + b1_ref[...], 0.0)
    h2 = jnp.dot(h1.astype(w2_ref.dtype), w2_ref[...],
                 preferred_element_type=jnp.float32) + b2_ref[...]
    h2 = jnp.maximum(h2, 0.0)
    o_ref[...] = jnp.sum(h2 * w3_ref[...], axis=-1, keepdims=True) + b3_ref[0, 0]


def critic_forward(obs, params, action=None, *, block_b=1024):
    """Pallas implementation of Critic.forward.

    obs:    [B, input_dims] float32
    action: optional [B, action_dims] float32 (PyTorch concatenates; here fc1 is split)
    params: see init_critic_params (weights stored (in, out), hidden padded to 128,
            fc1/fc2 weights in bf16 by default).
    """
    obs = obs.astype(jnp.float32)
    B, d_obs = obs.shape

    # Batch tile: multiple of 8 sublanes, large (up to block_b) so per-grid-step
    # overhead (~0.35 us) amortizes. Cap so B >= 16 yields >= 2 tiles (two v7x TCs).
    tb = min(block_b, _round_up(B, 8))
    if B >= 16:
        tb = min(tb, _round_up((B + 1) // 2, 8))
    b_pad = _round_up(B, tb)
    if b_pad != B:
        obs = jnp.pad(obs, ((0, b_pad - B), (0, 0)))

    w1o, b1 = params["w1_obs"], params["b1"]
    w2, b2 = params["w2"], params["b2"]
    w3, b3 = params["w3"], params["b3"]
    hp = w2.shape[0]

    def resident(arr):
        # Whole-array block, constant index_map, single-buffered: fetched once per call
        # and stays in VMEM across all batch tiles (no pointless double buffer).
        nd = arr.ndim
        return pl.BlockSpec(arr.shape, lambda i, _n=nd: (0,) * _n,
                            pipeline_mode=pl.Buffered(1))

    smem_spec = pl.BlockSpec(memory_space=pltpu.MemorySpace.SMEM)
    nbytes = lambda a: a.size * a.dtype.itemsize

    if action is not None:
        action = action.astype(jnp.float32)
        d_act = action.shape[1]
        if b_pad != B:
            action = jnp.pad(action, ((0, b_pad - B), (0, 0)))
        w1a = params["w1_act"]
        kernel = _critic_kernel_obs_act
        in_specs = [
            pl.BlockSpec((tb, d_obs), lambda i: (i, 0)),
            pl.BlockSpec((tb, d_act), lambda i: (i, 0)),
            resident(w1o), resident(w1a), resident(b1),
            resident(w2), resident(b2), resident(w3),
            smem_spec,
        ]
        args = (obs, action, w1o, w1a, b1, w2, b2, w3, b3)
        weight_bytes = sum(nbytes(a) for a in (w1o, w1a, b1, w2, b2, w3))
        stream_bytes = 2 * tb * (d_obs + d_act) * 4          # double-buffered in tiles
    else:
        kernel = _critic_kernel_obs
        in_specs = [
            pl.BlockSpec((tb, d_obs), lambda i: (i, 0)),
            resident(w1o), resident(b1),
            resident(w2), resident(b2), resident(w3),
            smem_spec,
        ]
        args = (obs, w1o, b1, w2, b2, w3, b3)
        weight_bytes = sum(nbytes(a) for a in (w1o, b1, w2, b2, w3))
        stream_bytes = 2 * tb * d_obs * 4

    # VMEM budget: single-buffered resident weights + double-buffered input/output tiles
    # + f32 h1/h2 live values, with ~50% headroom for compiler temporaries. Floor of
    # 32 MiB (covers v5e's 16 MiB default scoped limit), capped well inside v5e/v6e VMEM.
    vmem_needed = weight_bytes + stream_bytes + 2 * tb * 4 + 2 * tb * hp * 4
    vmem_limit = int(min(max(int(1.5 * vmem_needed), 32 * 1024 * 1024),
                         100 * 1024 * 1024))

    out = pl.pallas_call(
        kernel,
        out_shape=jax.ShapeDtypeStruct((b_pad, 1), jnp.float32),
        grid=(b_pad // tb,),
        in_specs=in_specs,
        out_specs=pl.BlockSpec((tb, 1), lambda i: (i, 0)),
        compiler_params=pltpu.CompilerParams(
            dimension_semantics=("parallel",),   # shard batch tiles across TCs
            vmem_limit_bytes=vmem_limit,
        ),
    )(*args)
    return out[:B]


def _xavier_uniform(key, out_features, in_features):
    # Matches torch.nn.init.xavier_uniform_ on a (out, in) weight with gain=1.
    bound = jnp.sqrt(6.0 / (in_features + out_features))
    return jax.random.uniform(key, (out_features, in_features), jnp.float32, -bound, bound)


def init_critic_params(key, input_dims, hidden_size, action_dims=None, *,
                       lane=128, matmul_dtype=jnp.bfloat16):
    """Weights stored (in, out); hidden axis zero-padded to a multiple of 128.

    fc1/fc2 weights are stored in `matmul_dtype` (bf16 by default: full-rate MXU, half
    the weight DMA/VMEM). Biases and the q-head row stay f32. Pass
    matmul_dtype=jnp.float32 if the RL use-case cannot tolerate bf16 matmul rounding.
    NOTE: padded rows/cols MUST stay exactly zero; anything loading an external
    checkpoint into these buffers must zero the pad regions explicitly.
    """
    in_dims = input_dims if action_dims is None else input_dims + action_dims
    hp = _round_up(hidden_size, lane)
    k1, k2, k3 = jax.random.split(key, 3)

    w1_t = _xavier_uniform(k1, hidden_size, in_dims)      # (H, in)
    w2_t = _xavier_uniform(k2, hidden_size, hidden_size)  # (H, H)
    w3_t = _xavier_uniform(k3, 1, hidden_size)            # (1, H)

    w1 = jnp.zeros((in_dims, hp), jnp.float32).at[:, :hidden_size].set(w1_t.T)
    w2 = jnp.zeros((hp, hp), jnp.float32).at[:hidden_size, :hidden_size].set(w2_t.T)
    w3 = jnp.zeros((1, hp), jnp.float32).at[:, :hidden_size].set(w3_t)

    w1 = w1.astype(matmul_dtype)
    w2 = w2.astype(matmul_dtype)

    params = {
        "b1": jnp.zeros((1, hp), jnp.float32),
        "w2": w2,
        "b2": jnp.zeros((1, hp), jnp.float32),
        "w3": w3,                       # (1, hp) f32 row for the exact q-head reduction
        "b3": jnp.zeros((1, 1), jnp.float32),
    }
    if action_dims is None:
        params["w1_obs"] = w1
    else:
        params["w1_obs"] = w1[:input_dims]   # (input_dims, hp)
        params["w1_act"] = w1[input_dims:]   # (action_dims, hp)
    return params


if __name__ == "__main__":
    key = jax.random.PRNGKey(0)
    k_params, k_obs, k_act = jax.random.split(key, 3)

    batch = 8
    input_dims = 16
    action_dims = 4
    hidden_size = 32

    params = init_critic_params(k_params, input_dims, hidden_size, action_dims)

    obs = jax.random.normal(k_obs, (batch, input_dims), jnp.float32)
    action = jax.random.normal(k_act, (batch, action_dims), jnp.float32)

    q = critic_forward(obs, params, action)
    jax.block_until_ready(q)

    # Pure-JAX reference of the same math (same bf16 weights, f32 accumulation; the
    # padded hidden columns are exactly zero, so this matches the unpadded PyTorch
    # module up to the bf16 weight rounding).
    x = jnp.concatenate([obs, action], axis=1)
    w1_full = jnp.concatenate([params["w1_obs"], params["w1_act"]], axis=0)
    h1 = jnp.maximum(
        jnp.dot(x.astype(w1_full.dtype), w1_full,
                preferred_element_type=jnp.float32) + params["b1"], 0.0)
    h2 = jnp.maximum(
        jnp.dot(h1.astype(params["w2"].dtype), params["w2"],
                preferred_element_type=jnp.float32) + params["b2"], 0.0)
    q_ref = jnp.sum(h2 * params["w3"], axis=-1, keepdims=True) + params["b3"][0, 0]

    assert q.shape == (batch, 1)
    assert jnp.allclose(q, q_ref, atol=2e-4, rtol=2e-4), "mismatch vs reference"

    print("KERNEL_OK")
</pallas_src>

<mosaic_0001>
module attributes {stable_mosaic.version = 11 : i64} {
  func.func @_critic_kernel_obs_act(%arg0: i32, %arg1: memref<8x16xf32, #tpu.memory_space<vmem>>, %arg2: memref<8x4xf32, #tpu.memory_space<vmem>>, %arg3: memref<16x128xbf16, #tpu.memory_space<vmem>>, %arg4: memref<4x128xbf16, #tpu.memory_space<vmem>>, %arg5: memref<1x128xf32, #tpu.memory_space<vmem>>, %arg6: memref<128x128xbf16, #tpu.memory_space<vmem>>, %arg7: memref<1x128xf32, #tpu.memory_space<vmem>>, %arg8: memref<1x128xf32, #tpu.memory_space<vmem>>, %arg9: memref<1x1xf32, #tpu.memory_space<smem>>, %arg10: memref<8x1xf32, #tpu.memory_space<vmem>>) attributes {dimension_semantics = [#tpu.dimension_semantics<parallel>], iteration_bounds = array<i64: 1>, scalar_prefetch = 0 : i64, scratch_operands = 0 : i64, tpu.core_type = #tpu.core_type<tc>, window_params = [{transform_indices = @transform_0, window_bounds = array<i64: 8, 16>}, {transform_indices = @transform_1, window_bounds = array<i64: 8, 4>}, {pipeline_mode = #tpu.pipeline_mode<synchronous>, transform_indices = @transform_2, window_bounds = array<i64: 16, 128>}, {pipeline_mode = #tpu.pipeline_mode<synchronous>, transform_indices = @transform_3, window_bounds = array<i64: 4, 128>}, {pipeline_mode = #tpu.pipeline_mode<synchronous>, transform_indices = @transform_4, window_bounds = array<i64: 1, 128>}, {pipeline_mode = #tpu.pipeline_mode<synchronous>, transform_indices = @transform_5, window_bounds = array<i64: 128, 128>}, {pipeline_mode = #tpu.pipeline_mode<synchronous>, transform_indices = @transform_6, window_bounds = array<i64: 1, 128>}, {pipeline_mode = #tpu.pipeline_mode<synchronous>, transform_indices = @transform_7, window_bounds = array<i64: 1, 128>}, {transform_indices = @transform_8, window_bounds = array<i64: 1, 1>}, {transform_indices = @transform_9, window_bounds = array<i64: 8, 1>}]} {
    %c0 = arith.constant 0 : index
    %c0_0 = arith.constant 0 : index
    %0 = vector.load %arg1[%c0, %c0_0] : memref<8x16xf32, #tpu.memory_space<vmem>>, vector<8x16xf32>
    %1 = arith.truncf %0 : vector<8x16xf32> to vector<8x16xbf16>
    %c0_1 = arith.constant 0 : index
    %c0_2 = arith.constant 0 : index
    %2 = vector.load %arg3[%c0_1, %c0_2] : memref<16x128xbf16, #tpu.memory_space<vmem>>, vector<16x128xbf16>
    %cst = arith.constant dense<0.000000e+00> : vector<8x128xf32>
    %3 = tpu.matmul %1, %2, %cst {dimension_numbers = #tpu.dot_dimension_numbers<[1], [0], [0], [1], [0, 0, 1, 1], [], []>} : vector<8x16xbf16>, vector<16x128xbf16>, vector<8x128xf32> -> vector<8x128xf32>
    %c0_3 = arith.constant 0 : index
    %c0_4 = arith.constant 0 : index
    %4 = vector.load %arg2[%c0_3, %c0_4] : memref<8x4xf32, #tpu.memory_space<vmem>>, vector<8x4xf32>
    %5 = arith.truncf %4 : vector<8x4xf32> to vector<8x4xbf16>
    %c0_5 = arith.constant 0 : index
    %c0_6 = arith.constant 0 : index
    %6 = vector.load %arg4[%c0_5, %c0_6] : memref<4x128xbf16, #tpu.memory_space<vmem>>, vector<4x128xbf16>
    %cst_7 = arith.constant dense<0.000000e+00> : vector<8x128xf32>
    %7 = tpu.matmul %5, %6, %cst_7 {dimension_numbers = #tpu.dot_dimension_numbers<[1], [0], [0], [1], [0, 0, 1, 1], [], []>} : vector<8x4xbf16>, vector<4x128xbf16>, vector<8x128xf32> -> vector<8x128xf32>
    %8 = arith.addf %3, %7 : vector<8x128xf32>
    %c0_8 = arith.constant 0 : index
    %c0_9 = arith.constant 0 : index
    %9 = vector.load %arg5[%c0_8, %c0_9] : memref<1x128xf32, #tpu.memory_space<vmem>>, vector<1x128xf32>
    %10 = vector.broadcast %9 : vector<1x128xf32> to vector<8x128xf32>
    %11 = arith.addf %8, %10 : vector<8x128xf32>
    %cst_10 = arith.constant 0.000000e+00 : f32
    %12 = vector.broadcast %cst_10 : f32 to vector<8x128xf32>
    %13 = arith.maximumf %11, %12 : vector<8x128xf32>
    %14 = arith.truncf %13 : vector<8x128xf32> to vector<8x128xbf16>
    %c0_11 = arith.constant 0 : index
    %c0_12 = arith.constant 0 : index
    %15 = vector.load %arg6[%c0_11, %c0_12] : memref<128x128xbf16, #tpu.memory_space<vmem>>, vector<128x128xbf16>
    %cst_13 = arith.constant dense<0.000000e+00> : vector<8x128xf32>
    %16 = tpu.matmul %14, %15, %cst_13 {dimension_numbers = #tpu.dot_dimension_numbers<[1], [0], [0], [1], [0, 0, 1, 1], [], []>} : vector<8x128xbf16>, vector<128x128xbf16>, vector<8x128xf32> -> vector<8x128xf32>
    %c0_14 = arith.constant 0 : index
    %c0_15 = arith.constant 0 : index
    %17 = vector.load %arg7[%c0_14, %c0_15] : memref<1x128xf32, #tpu.memory_space<vmem>>, vector<1x128xf32>
    %18 = vector.broadcast %17 : vector<1x128xf32> to vector<8x128xf32>
    %19 = arith.addf %16, %18 : vector<8x128xf32>
    %cst_16 = arith.constant 0.000000e+00 : f32
    %20 = vector.broadcast %cst_16 : f32 to vector<8x128xf32>
    %21 = arith.maximumf %19, %20 : vector<8x128xf32>
    %c0_17 = arith.constant 0 : index
    %c0_18 = arith.constant 0 : index
    %22 = vector.load %arg8[%c0_17, %c0_18] : memref<1x128xf32, #tpu.memory_space<vmem>>, vector<1x128xf32>
    %23 = vector.broadcast %22 : vector<1x128xf32> to vector<8x128xf32>
    %24 = arith.mulf %21, %23 : vector<8x128xf32>
    %cst_19 = arith.constant dense<0.000000e+00> : vector<8xf32>
    %25 = vector.multi_reduction <add>, %24, %cst_19 [1] : vector<8x128xf32> to vector<8xf32>
    %26 = vector.shape_cast %25 : vector<8xf32> to vector<8x1xf32>
    %c0_20 = arith.constant 0 : index
    %c0_21 = arith.constant 0 : index
    %27 = memref.load %arg9[%c0_20, %c0_21] : memref<1x1xf32, #tpu.memory_space<smem>>
    %28 = vector.broadcast %27 : f32 to vector<8x1xf32>
    %29 = arith.addf %26, %28 : vector<8x1xf32>
    %c0_22 = arith.constant 0 : index
    %c0_23 = arith.constant 0 : index
    %30 = vector.load %arg10[%c0_22, %c0_23] : memref<8x1xf32, #tpu.memory_space<vmem>>, vector<8x1xf32>
    tpu.vector_store %arg10[%c0_22, %c0_23], %29 {strides = array<i32>} : memref<8x1xf32, #tpu.memory_space<vmem>>, vector<8x1xf32>,
    return
  }
  func.func @transform_0(%arg0: i32) -> (i32, i32) {
    %c0_i32 = arith.constant 0 : i32
    %c0_i32_0 = arith.constant 0 : i32
    return %arg0, %c0_i32 : i32, i32
  }
  func.func @transform_1(%arg0: i32) -> (i32, i32) {
    %c0_i32 = arith.constant 0 : i32
    %c0_i32_0 = arith.constant 0 : i32
    return %arg0, %c0_i32 : i32, i32
  }
  func.func @transform_2(%arg0: i32) -> (i32, i32) {
    %c0_i32 = arith.constant 0 : i32
    %c0_i32_0 = arith.constant 0 : i32
    %c0_i32_1 = arith.constant 0 : i32
    return %c0_i32, %c0_i32_0 : i32, i32
  }
  func.func @transform_3(%arg0: i32) -> (i32, i32) {
    %c0_i32 = arith.constant 0 : i32
    %c0_i32_0 = arith.constant 0 : i32
    %c0_i32_1 = arith.constant 0 : i32
    return %c0_i32, %c0_i32_0 : i32, i32
  }
  func.func @transform_4(%arg0: i32) -> (i32, i32) {
    %c0_i32 = arith.constant 0 : i32
    %c0_i32_0 = arith.constant 0 : i32
    %c0_i32_1 = arith.constant 0 : i32
    return %c0_i32, %c0_i32_0 : i32, i32
  }
  func.func @transform_5(%arg0: i32) -> (i32, i32) {
    %c0_i32 = arith.constant 0 : i32
    %c0_i32_0 = arith.constant 0 : i32
    %c0_i32_1 = arith.constant 0 : i32
    return %c0_i32, %c0_i32_0 : i32, i32
  }
  func.func @transform_6(%arg0: i32) -> (i32, i32) {
    %c0_i32 = arith.constant 0 : i32
    %c0_i32_0 = arith.constant 0 : i32
    %c0_i32_1 = arith.constant 0 : i32
    return %c0_i32, %c0_i32_0 : i32, i32
  }
  func.func @transform_7(%arg0: i32) -> (i32, i32) {
    %c0_i32 = arith.constant 0 : i32
    %c0_i32_0 = arith.constant 0 : i32
    %c0_i32_1 = arith.constant 0 : i32
    return %c0_i32, %c0_i32_0 : i32, i32
  }
  func.func @transform_8(%arg0: i32) -> (i32, i32) {
    %c0_i32 = arith.constant 0 : i32
    %c0_i32_0 = arith.constant 0 : i32
    %c0_i32_1 = arith.constant 0 : i32
    return %c0_i32, %c0_i32_0 : i32, i32
  }
  func.func @transform_9(%arg0: i32) -> (i32, i32) {
    %c0_i32 = arith.constant 0 : i32
    %c0_i32_0 = arith.constant 0 : i32
    return %arg0, %c0_i32 : i32, i32
  }
}

</mosaic_0001>

<bundles_post_ra>
// kernel: tpu_custom_call.1
= control target key start
LH: loop header
LB: loop body
LE: loop exit
PB: predicated region body
PF: predicated region fallthrough
CT: control target
= control target key end

     0   :  { %15 = vsyncpa [#allocation4], 0  ;;  %s392_s30 = smov [#allocation3]   ;;  %s489_s0 = inlined_call_operand.vmem [shape: f32[8,16], index: 0, kind: input, shape index: {}]   ;;  %s490_s1 = inlined_call_operand.vmem [shape: f32[8,4], index: 1, kind: input, shape index: {}]   ;;  %s491_s2 = inlined_call_operand.vmem [shape: bf16[16,128], index: 2, kind: input, shape index: {}]   ;;  %s492_s3 = inlined_call_operand.vmem [shape: bf16[4,128], index: 3, kind: input, shape index: {}]   ;;  %s493_s4 = inlined_call_operand.vmem [shape: f32[1,128], index: 4, kind: input, shape index: {}]   ;;  %s494_s5 = inlined_call_operand.hbm [shape: bf16[128,128], index: 5, kind: input, shape index: {}]   ;;  %s495_s6 = inlined_call_operand.vmem [shape: f32[1,128], index: 6, kind: input, shape index: {}]   ;;  %s496_s7 = inlined_call_operand.vmem [shape: f32[1,128], index: 7, kind: input, shape index: {}]   ;;  %s497_s8 = inlined_call_operand.<no memory space> [shape: f32[1,1], index: 8, kind: input, shape index: {}]   ;;  %s498_s9 = inlined_call_operand.vmem [shape: f32[8,1], index: 9, kind: output, shape index: {}]  }
   0x1   :  { %s31_s10 = sshll.u32 %s392_s30, 4  ;;  %s368_s13 = scalar_lea.hbm %s494_s5, 1024  ;;  %s32_s10 = int_to_ptr.vmem [resolvable:$true] %s31_s10 }
   0x2   :  { %p369_p0 = scmp.ne.s32.totalorder %s494_s5, %s368_s13  ;;  %p372_p1 = scmp.lt.u32.totalorder %s368_s13, %s494_s5 }
   0x4   :  { %p374_p2 = pnand %p372_p1, %p369_p0 }
   0x6   :  { %377 = shalt.err (!%p374_p2)
}
   0x7   :  { %s378_s18 = scalar_lea.vmem %s32_s10, 1024  ;;  %p383_p4 = scmp.lt.s32.totalorder %s32_s10, %s32_s10 }
   0x8   :  { %p379_p3 = scmp.ne.s32.totalorder %s32_s10, %s378_s18  ;;  %p384_p5 = scmp.lt.s32.totalorder %s378_s18, %s378_s18 }
   0xa   :  { %p385_p6 = por %p384_p5, %p383_p4 }
   0xc   :  { %p386_p7 = pnand %p385_p6, %p379_p3 }
   0xe   :  { %389 = shalt.err (!%p386_p7)
}
   0xf   :  { %s393_s19 = smov 64   ;;  %s394_s20 = smov 4  }
  0x10   :  { %37 = dma.hbm_to_vmem [thread:$0]  %s494_s5, 1024, %s32_s10, [#allocation4], %s393_s19, %s393_s19, %s394_s20  }
  0x11   :  { %390 = dma.done.wait [#allocation4], 1024  }
  0x12   :  { %391 = vsyncadd [#allocation4], 4294966272  ;;  %v395_v0 = vmov 0.0   ;;  %vm396_vm0 = vmmov 0   ;;  %vm59_vm1 = vcmask 1041408   ;;  %v52_v2 = vld [vmem:[%s490_s1] sm:$0xff]  ;;  %v286_v38 = vstv %s497_s8 }
  0x13   :  { %322 = vmatprep.subr.bf16.mxu1 %v395_v0  ;;  %324 = vmatprep.mubr.msk.bf16.mxu1 %vm396_vm0, %v395_v0  ;;  %v54_v1 = vld [vmem:[%s492_s3] sm:$0x3]  ;;  %v53_v4 = vpack.c.bf16 %v52_v2, %v52_v2  ;;  %vm55_vm2 = vcmask 31744   ;;  %v361_v7 = vld [vmem:[#allocation3 + $0x8] sm:$0xff]   ;;  %v362_v9 = vld [vmem:[#allocation3 + $0x10] sm:$0xff]   ;;  %vm109_vm3 = vcmask 130048  }
  0x14   :  { %334 = vmatprep.subr.bf16.mxu0 %v395_v0  ;;  %350 = vmatprep.mubr.msk.bf16.mxu0 %vm396_vm0, %v395_v0  ;;  %v61_v3 = vsel %vm59_vm1, %v54_v1, 0  ;;  %v359_v5 = vld [vmem:[%s491_s2] sm:$0xff]   ;;  %v363_v11 = vld [vmem:[#allocation3 + $0x18] sm:$0xff]   ;;  %v365_v13 = vld [vmem:[#allocation3 + $0x28] sm:$0xff]   ;;  %vm288_vm4 = vcmask 7168  }
  0x15   :  { %323 = vmatpush3.bf16.msra.mxu1 %v61_v3  ;;  %v360_v6 = vld [vmem:[#allocation3] sm:$0xff]   ;;  %v366_v14 = vld [vmem:[#allocation3 + $0x30] sm:$0xff]   ;;  %v367_v15 = vld [vmem:[#allocation3 + $0x38] sm:$0xff]  }
  0x16   :  { %328 = vmatprep.subr.bf16.mxu1 %v395_v0  ;;  %335 = vmatpush3.bf16.msra.mxu0 %v360_v6  ;;  %v48_v8 = vld [vmem:[%s489_s0] sm:$0xff] }
  0x17   :  { %336 = vmatprep.subr.bf16.mxu0 %v395_v0  ;;  %v49_v10 = vpack.c.bf16 %v48_v8, %v48_v8  ;;  %v364_v12 = vld [vmem:[#allocation3 + $0x20] sm:$0xff]  }
  0x18   :  { %325 = vmatmul.mubr.msk.bf16.vlgmr.msra.gmra.mrb[0].mxu1 %vm55_vm2, %v53_v4  ;;  %v298_v21 = vld [vmem:[%s493_s4] ss:$0 sm:$0xff] }
  0x19   :  { %329 = vmatpush3.bf16.msra.mxu1 %v359_v5  ;;  %330 = vmatprep.mubr.msk.bf16.mxu1 %vm396_vm0, %v395_v0  ;;  %v299_v29 = vld [vmem:[%s495_s6] ss:$0 sm:$0xff] }
  0x1a   :  { %337 = vmatpush3.bf16.msra.mxu0 %v361_v7  ;;  %v308_v34 = vld [vmem:[%s496_s7] ss:$0 sm:$0xff] }
  0x1b   :  { %338 = vmatprep.subr.bf16.mxu0 %v395_v0 }
  0x1e   :  { %339 = vmatpush3.bf16.msra.mxu0 %v362_v9 }
  0x1f   :  { %340 = vmatprep.subr.bf16.mxu0 %v395_v0 }
  0x20   :  { %331 = vmatmul.mubr.msk.bf16.vlgmr.msra.gmra.mrb[4].mxu1 %vm109_vm3, %v49_v10 }
  0x22   :  { %341 = vmatpush3.bf16.msra.mxu0 %v363_v11 }
  0x23   :  { %342 = vmatprep.subr.bf16.mxu0 %v395_v0 }
  0x26   :  { %343 = vmatpush3.bf16.msra.mxu0 %v364_v12 }
  0x27   :  { %344 = vmatprep.subr.bf16.mxu0 %v395_v0 }
  0x2a   :  { %345 = vmatpush3.bf16.msra.mxu0 %v365_v13 }
  0x2b   :  { %346 = vmatprep.subr.bf16.mxu0 %v395_v0 }
  0x2e   :  { %347 = vmatpush3.bf16.msra.mxu0 %v366_v14 }
  0x2f   :  { %348 = vmatprep.subr.bf16.mxu0 %v395_v0 }
  0x32   :  { %349 = vmatpush3.bf16.msra.mxu0 %v367_v15 }
  0xeb   :  { %v97_v16 = vpop.f32.mrb[0].mxu1 }
  0xec   :  { %v326_v17 = vpop.f32.mrb[1].mxu1 }
  0xed   :  { %v100_v18 = vpop.f32.mrb[2].mxu1 }
  0xee   :  { %v327_v19 = vpop.f32.mrb[3].mxu1 }
  0xf3   :  { %v147_v20 = vpop.f32.mrb[4].mxu1 }
  0xf4   :  { %v148_v22 = vadd.f32 %v147_v20, %v97_v16  ;;  %v332_v23 = vpop.f32.mrb[5].mxu1 }
  0xf5   :  { %v150_v24 = vpop.f32.mrb[6].mxu1 }
  0xf6   :  { %v160_v25 = vadd.f32 %v298_v21, %v148_v22  ;;  %v333_v26 = vpop.f32.mrb[7].mxu1 }
  0xf8   :  { %v161_v27 = vmax.f32 %v160_v25, 0.0 }
  0xfa   :  { %v162_v28 = vpack.c.bf16 %v161_v27, %v161_v27 }
  0xfc   :  { %351 = vmatmul.mubr.bf16.vlgmr.msra.gmra.mrb[0].mxu0 %v162_v28 }
 0x1cf   :  { %v268_v30 = vpop.f32.mrb[0].mxu0 }
 0x1d0   :  { %v269_v31 = vadd.f32 %v299_v29, %v268_v30  ;;  %v352_v32 = vpop.f32.mrb[1].mxu0 }
 0x1d1   :  { %v271_v33 = vpop.f32.mrb[2].mxu0 }
 0x1d2   :  { %v274_v35 = vmax.f32 %v269_v31, 0.0  ;;  %v353_v36 = vpop.f32.mrb[3].mxu0 }
 0x1d4   :  { %v282_v37 = vmul.f32 %v308_v34, %v274_v35 }
 0x1d6   :  { %283 = vadd.xlane.f32.xlu0 %v282_v37 }
 0x263   :  { %v284_v39 = vpop.xlane.xlu0 %283 }
 0x264   :  { %v287_v40 = vadd.f32 %v286_v38, %v284_v39 }
 0x266   :  { %289 = vst.msk [vmem:[%s498_s9] sm:$0xff] %vm288_vm4, %v287_v40 }
 0x267   :  { %294 = vsyncpa [#allocation4], 1 }

</bundles_post_ra>
